<compile_context>
chip_gen: v7x
topology: tpu7x:2x2x1
jax: 0.10.0
libtpu: 0.0.40
codegen_flags: <defaults>
</compile_context>

<pallas_src>
import functools
import math

import jax
import jax.numpy as jnp
from jax.experimental import pallas as pl
from jax.experimental.pallas import tpu as pltpu


_HALO_ROWS = 8                 # sublane-aligned halo block (>= max pad of 3)
_TARGET_BLOCK_BYTES = 4 << 20  # ~1-4 MiB per-step input tile (HBM roofline knee)
_MIN_STEPS = 4                 # >= 2 grid steps per v7x TensorCore
_PICK_SLACK = 32 << 10         # allowance for scalars / small column temps


def eca_kernel_size(planes, gamma=2, b=1):
    # Mirrors the PyTorch module exactly (which uses a literal "+ 1").
    t = int(abs(math.log(planes, 2) + 1) / gamma)
    k = t if t % 2 else t + 1
    return k


def _sublane_quantum(itemsize):
    # native (sublane, lane) tiles: f32 (8,128), bf16 (16,128), int8/fp8 (32,128)
    if itemsize >= 4:
        return 8
    if itemsize == 2:
        return 16
    return 32


# ----------------------------------------------------------------------------
# Shared in-kernel helper: k-tap channel conv (cross-correlation) + sigmoid.
# ----------------------------------------------------------------------------
def _channel_conv_sigmoid(col, w_ref, ch, C, *, base, rows):
    """scale[r] = sigmoid( sum_j w[j] * col[base + r + (j - pad)] ).

    `ch[r]` is the row's channel index inside its sample; taps whose channel
    (ch + j - pad) falls outside [0, C) are masked to zero, which reproduces
    the Conv2d zero padding and prevents samples packed in one block (or roll
    wrap-around) from mixing. Shifts use pltpu.roll (XLU) so no sublane
    relayout sits on the pool -> scale -> multiply critical path.
    """
    L = col.shape[0]
    k = w_ref.shape[0]
    pad = k // 2
    conv = jnp.zeros((rows, 1), jnp.float32)
    for j in range(k):                              # k is tiny (1/3/5/7), static
        d = j - pad
        off = base + d
        if off == 0:
            tap = col[:rows, :]
        else:
            tap = pltpu.roll(col, shift=(-off) % L, axis=0)[:rows, :]
        if d != 0:
            valid = jnp.logical_and(ch + d >= 0, ch + d < C)
            tap = jnp.where(valid, tap, 0.0)
        conv = conv + w_ref[j] * tap
    return jax.nn.sigmoid(conv)


# ----------------------------------------------------------------------------
# Main fused kernel: whole samples per block (pool + conv + sigmoid + scale).
# ----------------------------------------------------------------------------
def _eca_fused_kernel(w_ref, chan_ref, x_ref, o_ref, *, C):
    # w_ref:    (k,)    f32 SMEM   conv taps (cross-correlation order)
    # chan_ref: (R, 1)  i32 VMEM   channel id of each row (resident block)
    # x_ref:    (R, HW)      VMEM  R = nb*C rows of the flattened input
    # o_ref:    (R, HW)      VMEM
    pooled = jnp.mean(x_ref[...], axis=1, keepdims=True, dtype=jnp.float32)
    scale = _channel_conv_sigmoid(pooled, w_ref, chan_ref[...], C,
                                  base=0, rows=pooled.shape[0])
    o_ref[...] = x_ref[...] * scale.astype(o_ref.dtype)


# ----------------------------------------------------------------------------
# Halo kernel: one channel-chunk of a single (oversized) sample per step.
# ----------------------------------------------------------------------------
def _eca_halo_kernel(w_ref, x_ref, pre_ref, post_ref, o_ref, *, C, Tc):
    # pre/post are the 8 rows just before / after this chunk (same array x);
    # their pooled values supply the conv halo at interior chunk boundaries.
    # Halo rows that belong to another sample (or are clamped at the array
    # edges) are never used unmasked: the channel mask zeroes those taps.
    pooled = jnp.mean(x_ref[...], axis=1, keepdims=True, dtype=jnp.float32)
    pre_p = jnp.mean(pre_ref[...], axis=1, keepdims=True, dtype=jnp.float32)
    post_p = jnp.mean(post_ref[...], axis=1, keepdims=True, dtype=jnp.float32)
    ext = jnp.concatenate([pre_p, pooled, post_p], axis=0)      # (Tc + 16, 1)
    c = pl.program_id(1)                                        # chunk index inside sample
    ch = c * Tc + jax.lax.broadcasted_iota(jnp.int32, (Tc, 1), 0)
    scale = _channel_conv_sigmoid(ext, w_ref, ch, C, base=_HALO_ROWS, rows=Tc)
    o_ref[...] = x_ref[...] * scale.astype(o_ref.dtype)


# ----------------------------------------------------------------------------
# Block-size selection (VMEM-budget aware, roofline-sized, dtype-aware).
# ----------------------------------------------------------------------------
def _pick_nb(N, C, HW, itemsize, budget, sub):
    """#batch elements per fused-path step: ~1-4 MiB tiles, >= 4 steps when
    possible, in+out double-buffered footprint within the VMEM budget."""
    per_sample = C * HW * itemsize
    fitting = []
    for nb in range(1, N + 1):
        if N % nb:
            continue
        R = nb * C
        if R % sub:                               # keep the native sublane tile
            continue
        need = 4 * nb * per_sample + 4 * R * 4 + _PICK_SLACK
        if need > budget:
            continue
        fitting.append(nb)
    if not fitting:
        return None

    def pref(nb):
        blk = nb * per_sample
        steps = N // nb
        return (1 if blk <= _TARGET_BLOCK_BYTES else 0,   # stay near roofline knee
                min(steps, _MIN_STEPS),                   # enough steps to pipeline / split TCs
                blk if blk <= _TARGET_BLOCK_BYTES else -blk)
    return max(fitting, key=pref)


def _pick_tc(C, HW, itemsize, budget, sub):
    """Channel-chunk rows for the halo path (one sample does not fit)."""
    halo = 4 * _HALO_ROWS * HW * itemsize         # 2 halo streams, double-buffered
    fitting = []
    for t in range(sub, C, sub):
        if C % t:
            continue
        need = 4 * t * HW * itemsize + halo + _PICK_SLACK
        if need > budget:
            continue
        fitting.append(t)
    if not fitting:
        return None
    good = [t for t in fitting if t * HW * itemsize <= _TARGET_BLOCK_BYTES]
    return max(good) if good else min(fitting)


# ----------------------------------------------------------------------------
# Per-generation VMEM sizing.
# ----------------------------------------------------------------------------
def _vmem_capacity_bytes():
    try:
        return int(pltpu.get_tpu_info().vmem_capacity_bytes)
    except Exception:                              # non-TPU trace / older API
        return 64 << 20                            # conservative (v7x-sized)


def _vmem_budgets(user_budget):
    cap = _vmem_capacity_bytes()
    if cap >= (96 << 20):              # v5e / v6e: 128 MiB physical VMEM
        default_budget, limit_cap = 64 << 20, 96 << 20
    else:                              # v7x-class: 64 MiB physical VMEM
        default_budget, limit_cap = 40 << 20, 48 << 20
    budget = default_budget if user_budget is None else int(user_budget)
    return min(budget, limit_cap), limit_cap


def _vmem_limit(block_footprint_bytes, limit_cap):
    # scoped limit follows the real block footprint (+ slack for compiler
    # temporaries), floored at a value that is safe on every generation.
    return int(min(limit_cap, max(block_footprint_bytes + (4 << 20), 32 << 20)))


# ----------------------------------------------------------------------------
# Public forward.
# ----------------------------------------------------------------------------
def _eca_plain_jax(x, w32):
    # TODO(synk): degenerate shapes (no sublane-aligned channel tiling exists,
    # or one channel row is larger than the VMEM budget) fall back to plain JAX.
    N, C, H, W = x.shape
    k = w32.shape[0]
    pad = k // 2
    pooled = jnp.mean(x.astype(jnp.float32), axis=(2, 3))
    pp = jnp.pad(pooled, ((0, 0), (pad, pad)))
    conv = sum(w32[j] * pp[:, j:j + C] for j in range(k))
    scale = jax.nn.sigmoid(conv).astype(x.dtype)
    return x * scale[:, :, None, None]


def eca_forward(x, conv_weight, *, vmem_budget_bytes=None):
    """x: (N, C, H, W); conv_weight: (k,). Returns (N, C, H, W)."""
    N, C, H, W = x.shape
    HW = H * W
    k = int(conv_weight.shape[0])
    itemsize = x.dtype.itemsize
    sub = _sublane_quantum(itemsize)
    budget, limit_cap = _vmem_budgets(vmem_budget_bytes)

    x2 = x.reshape(N * C, HW)                      # free reshape (contiguous)
    w32 = conv_weight.astype(jnp.float32).reshape(k)

    # TODO(synk): for small / non-128-multiple HW (e.g. 7x7), pack several
    # channels per sublane row (or use a channels-last layout) so stores are
    # lane-dense instead of masked vst.msk.

    # ---------------- fused single-pass path (whole samples per block) -----
    nb = _pick_nb(N, C, HW, itemsize, budget, sub)
    if nb is not None:
        R = nb * C
        chan_idx = jnp.tile(jnp.arange(C, dtype=jnp.int32), nb).reshape(R, 1)
        cost = pl.CostEstimate(
            flops=int(2 * N * C * HW + 2 * k * N * C),
            transcendentals=int(N * C),
            bytes_accessed=int(2 * N * C * HW * itemsize + R * 4 + k * 4),
        )
        out2 = pl.pallas_call(
            functools.partial(_eca_fused_kernel, C=C),
            out_shape=jax.ShapeDtypeStruct((N * C, HW), x.dtype),
            grid=(N // nb,),
            in_specs=[
                pl.BlockSpec(memory_space=pltpu.SMEM),        # conv taps
                pl.BlockSpec((R, 1), lambda i: (0, 0)),       # resident channel ids
                pl.BlockSpec((R, HW), lambda i: (i, 0)),      # input rows
            ],
            out_specs=pl.BlockSpec((R, HW), lambda i: (i, 0)),
            compiler_params=pltpu.CompilerParams(
                # TODO(synk): verify "parallel" actually splits this axis over
                # both v7x TensorCores; switch to pltpu.CORE_PARALLEL if not.
                dimension_semantics=("parallel",),
                vmem_limit_bytes=_vmem_limit(
                    4 * R * HW * itemsize + 4 * R * 4, limit_cap),
            ),
            cost_estimate=cost,
        )(w32, chan_idx, x2)
        return out2.reshape(N, C, H, W)

    # ---------------- single-pass halo channel tiling (oversized sample) ---
    Tc = _pick_tc(C, HW, itemsize, budget, sub)
    if Tc is not None:
        cps = C // Tc                    # chunks per sample
        nrb = (N * C) // _HALO_ROWS      # total 8-row blocks (C % 8 == 0 here)
        thb = Tc // _HALO_ROWS
        crb = C // _HALO_ROWS

        def x_map(n, c):
            return (n * cps + c, 0)

        def pre_map(n, c):
            return (jnp.maximum(n * crb + c * thb - 1, 0), 0)

        def post_map(n, c):
            return (jnp.minimum(n * crb + (c + 1) * thb, nrb - 1), 0)

        cost = pl.CostEstimate(
            flops=int(2 * N * C * HW + 2 * k * N * C),
            transcendentals=int(N * C),
            bytes_accessed=int(
                (2 * N * C + 2 * _HALO_ROWS * N * cps) * HW * itemsize),
        )
        blk_bytes = (4 * Tc + 4 * _HALO_ROWS) * HW * itemsize
        out2 = pl.pallas_call(
            functools.partial(_eca_halo_kernel, C=C, Tc=Tc),
            out_shape=jax.ShapeDtypeStruct((N * C, HW), x.dtype),
            grid=(N, cps),
            in_specs=[
                pl.BlockSpec(memory_space=pltpu.SMEM),        # conv taps
                pl.BlockSpec((Tc, HW), x_map),                # chunk rows
                pl.BlockSpec((_HALO_ROWS, HW), pre_map),      # 8 rows before
                pl.BlockSpec((_HALO_ROWS, HW), post_map),     # 8 rows after
            ],
            out_specs=pl.BlockSpec((Tc, HW), x_map),
            compiler_params=pltpu.CompilerParams(
                dimension_semantics=("parallel", "parallel"),
                vmem_limit_bytes=_vmem_limit(blk_bytes, limit_cap),
            ),
            cost_estimate=cost,
        )(w32, x2, x2, x2)
        return out2.reshape(N, C, H, W)

    return _eca_plain_jax(x, w32)


# ----------------------------------------------------------------------------
# Pure-JAX reference mirroring the PyTorch forward (for validation).
# ----------------------------------------------------------------------------
def eca_reference(x, conv_weight):
    N, C, H, W = x.shape
    k = conv_weight.shape[0]
    pad = k // 2
    xf = x.astype(jnp.float32)
    pooled = jnp.mean(xf, axis=(2, 3))
    pp = jnp.pad(pooled, ((0, 0), (pad, pad)))
    conv = sum(conv_weight[j] * pp[:, j:j + C] for j in range(k))
    scale = jax.nn.sigmoid(conv)
    return xf * scale[:, :, None, None]


if __name__ == "__main__":
    def run_case(name, N, C, H, W, case_key, dtype=jnp.float32, tol=1e-4,
                 **kwargs):
        k = eca_kernel_size(C)
        kx, kw = jax.random.split(case_key)
        x = jax.random.normal(kx, (N, C, H, W), dtype=jnp.float32).astype(dtype)
        # PyTorch Conv2d default init: U(-1/sqrt(fan_in), 1/sqrt(fan_in)), fan_in=k
        bound = 1.0 / math.sqrt(k)
        w = jax.random.uniform(kw, (k,), minval=-bound, maxval=bound,
                               dtype=jnp.float32)
        out = eca_forward(x, w, **kwargs)
        out = jax.block_until_ready(out)
        assert out.shape == (N, C, H, W)
        assert out.dtype == x.dtype
        ref = eca_reference(x, w)
        err = float(jnp.max(jnp.abs(out.astype(jnp.float32) - ref)))
        assert err <= tol, f"{name}: max abs error {err} vs reference"

    key = jax.random.PRNGKey(0)
    k1, k2, k3, k4 = jax.random.split(key, 4)

    # k=3, lane-dense HW=256; policy packs 2 samples per block, 4 grid steps.
    run_case("fused_f32", 8, 8, 16, 16, k1)
    # k=5 (pad=2), 256 channels, small HW=64; one sample per block, 4 steps.
    run_case("fused_k5", 4, 256, 8, 8, k2)
    # tiny budget forces the single-pass halo channel-tiling path.
    run_case("halo", 2, 64, 8, 8, k3, vmem_budget_bytes=80 * 1024)
    # bf16 input (16-sublane tiles); looser tolerance for the low-precision dtype.
    run_case("fused_bf16", 4, 8, 16, 16, k4, dtype=jnp.bfloat16, tol=5e-2)

    print("KERNEL_OK")
</pallas_src>

<mosaic_0001>
module attributes {stable_mosaic.version = 11 : i64} {
  func.func @_eca_fused_kernel(%arg0: i32, %arg1: memref<3xf32, #tpu.memory_space<smem>>, %arg2: memref<16x1xi32, #tpu.memory_space<vmem>>, %arg3: memref<16x256xf32, #tpu.memory_space<vmem>>, %arg4: memref<16x256xf32, #tpu.memory_space<vmem>>) attributes {dimension_semantics = [#tpu.dimension_semantics<parallel>], iteration_bounds = array<i64: 4>, scalar_prefetch = 0 : i64, scratch_operands = 0 : i64, tpu.core_type = #tpu.core_type<tc>, window_params = [{transform_indices = @transform_0, window_bounds = array<i64: 3>}, {pipeline_mode = #tpu.pipeline_mode<synchronous>, transform_indices = @transform_1, window_bounds = array<i64: 16, 1>}, {transform_indices = @transform_2, window_bounds = array<i64: 16, 256>}, {transform_indices = @transform_3, window_bounds = array<i64: 16, 256>}]} {
    %c0 = arith.constant 0 : index
    %c0_0 = arith.constant 0 : index
    %0 = vector.load %arg3[%c0, %c0_0] : memref<16x256xf32, #tpu.memory_space<vmem>>, vector<16x256xf32>
    %cst = arith.constant dense<0.000000e+00> : vector<16xf32>
    %1 = vector.multi_reduction <add>, %0, %cst [1] : vector<16x256xf32> to vector<16xf32>
    %2 = vector.shape_cast %1 : vector<16xf32> to vector<16x1xf32>
    %cst_1 = arith.constant 2.560000e+02 : f32
    %3 = vector.broadcast %cst_1 : f32 to vector<16x1xf32>
    %4 = arith.divf %2, %3 : vector<16x1xf32>
    %c0_2 = arith.constant 0 : index
    %c0_3 = arith.constant 0 : index
    %5 = vector.load %arg2[%c0_2, %c0_3] : memref<16x1xi32, #tpu.memory_space<vmem>>, vector<16x1xi32>
    %cst_4 = arith.constant 0.000000e+00 : f32
    %6 = vector.broadcast %cst_4 : f32 to vector<16x1xf32>
    %c1_i32 = arith.constant 1 : i32
    %7 = tpu.dynamic_rotate %4 by %c1_i32 dim 0 : vector<16x1xf32>, i32 -> vector<16x1xf32>
    %c-1_i32 = arith.constant -1 : i32
    %8 = vector.broadcast %c-1_i32 : i32 to vector<16x1xi32>
    %9 = arith.addi %5, %8 : vector<16x1xi32>
    %c0_i32 = arith.constant 0 : i32
    %10 = vector.broadcast %c0_i32 : i32 to vector<16x1xi32>
    %11 = arith.cmpi sge, %9, %10 : vector<16x1xi32>
    %c-1_i32_5 = arith.constant -1 : i32
    %12 = vector.broadcast %c-1_i32_5 : i32 to vector<16x1xi32>
    %13 = arith.addi %5, %12 : vector<16x1xi32>
    %c8_i32 = arith.constant 8 : i32
    %14 = vector.broadcast %c8_i32 : i32 to vector<16x1xi32>
    %15 = arith.cmpi slt, %13, %14 : vector<16x1xi32>
    %16 = arith.andi %11, %15 : vector<16x1xi1>
    %cst_6 = arith.constant 0.000000e+00 : f32
    %17 = vector.broadcast %cst_6 : f32 to vector<16x1xf32>
    %18 = arith.select %16, %7, %17 : vector<16x1xi1>, vector<16x1xf32>
    %c0_7 = arith.constant 0 : index
    %19 = memref.load %arg1[%c0_7] : memref<3xf32, #tpu.memory_space<smem>>
    %20 = vector.broadcast %19 : f32 to vector<16x1xf32>
    %21 = arith.mulf %20, %18 : vector<16x1xf32>
    %22 = arith.addf %6, %21 : vector<16x1xf32>
    %c1 = arith.constant 1 : index
    %23 = memref.load %arg1[%c1] : memref<3xf32, #tpu.memory_space<smem>>
    %24 = vector.broadcast %23 : f32 to vector<16x1xf32>
    %25 = arith.mulf %24, %4 : vector<16x1xf32>
    %26 = arith.addf %22, %25 : vector<16x1xf32>
    %c15_i32 = arith.constant 15 : i32
    %27 = tpu.dynamic_rotate %4 by %c15_i32 dim 0 : vector<16x1xf32>, i32 -> vector<16x1xf32>
    %c1_i32_8 = arith.constant 1 : i32
    %28 = vector.broadcast %c1_i32_8 : i32 to vector<16x1xi32>
    %29 = arith.addi %5, %28 : vector<16x1xi32>
    %c0_i32_9 = arith.constant 0 : i32
    %30 = vector.broadcast %c0_i32_9 : i32 to vector<16x1xi32>
    %31 = arith.cmpi sge, %29, %30 : vector<16x1xi32>
    %c1_i32_10 = arith.constant 1 : i32
    %32 = vector.broadcast %c1_i32_10 : i32 to vector<16x1xi32>
    %33 = arith.addi %5, %32 : vector<16x1xi32>
    %c8_i32_11 = arith.constant 8 : i32
    %34 = vector.broadcast %c8_i32_11 : i32 to vector<16x1xi32>
    %35 = arith.cmpi slt, %33, %34 : vector<16x1xi32>
    %36 = arith.andi %31, %35 : vector<16x1xi1>
    %cst_12 = arith.constant 0.000000e+00 : f32
    %37 = vector.broadcast %cst_12 : f32 to vector<16x1xf32>
    %38 = arith.select %36, %27, %37 : vector<16x1xi1>, vector<16x1xf32>
    %c2 = arith.constant 2 : index
    %39 = memref.load %arg1[%c2] : memref<3xf32, #tpu.memory_space<smem>>
    %40 = vector.broadcast %39 : f32 to vector<16x1xf32>
    %41 = arith.mulf %40, %38 : vector<16x1xf32>
    %42 = arith.addf %26, %41 : vector<16x1xf32>
    %43 = arith.negf %42 : vector<16x1xf32>
    %44 = math.exp %43 : vector<16x1xf32>
    %cst_13 = arith.constant 1.000000e+00 : f32
    %45 = vector.broadcast %cst_13 : f32 to vector<16x1xf32>
    %46 = arith.addf %45, %44 : vector<16x1xf32>
    %47 = arith.divf %45, %46 : vector<16x1xf32>
    %c0_14 = arith.constant 0 : index
    %c0_15 = arith.constant 0 : index
    %48 = vector.load %arg3[%c0_14, %c0_15] : memref<16x256xf32, #tpu.memory_space<vmem>>, vector<16x256xf32>
    %49 = vector.broadcast %47 : vector<16x1xf32> to vector<16x256xf32>
    %50 = arith.mulf %48, %49 : vector<16x256xf32>
    %c0_16 = arith.constant 0 : index
    %c0_17 = arith.constant 0 : index
    %51 = vector.load %arg4[%c0_16, %c0_17] : memref<16x256xf32, #tpu.memory_space<vmem>>, vector<16x256xf32>
    tpu.vector_store %arg4[%c0_16, %c0_17], %50 {strides = array<i32>} : memref<16x256xf32, #tpu.memory_space<vmem>>, vector<16x256xf32>,
    return
  }
  func.func @transform_0(%arg0: i32) -> i32 {
    %c0_i32 = arith.constant 0 : i32
    %c0_i32_0 = arith.constant 0 : i32
    return %c0_i32 : i32
  }
  func.func @transform_1(%arg0: i32) -> (i32, i32) {
    %c0_i32 = arith.constant 0 : i32
    %c0_i32_0 = arith.constant 0 : i32
    %c0_i32_1 = arith.constant 0 : i32
    return %c0_i32, %c0_i32_0 : i32, i32
  }
  func.func @transform_2(%arg0: i32) -> (i32, i32) {
    %c0_i32 = arith.constant 0 : i32
    %c0_i32_0 = arith.constant 0 : i32
    return %arg0, %c0_i32 : i32, i32
  }
  func.func @transform_3(%arg0: i32) -> (i32, i32) {
    %c0_i32 = arith.constant 0 : i32
    %c0_i32_0 = arith.constant 0 : i32
    return %arg0, %c0_i32 : i32, i32
  }
}

</mosaic_0001>

<bundles_post_ra>
// kernel: tpu_custom_call.1
= control target key start
LH: loop header
LB: loop body
LE: loop exit
PB: predicated region body
PF: predicated region fallthrough
CT: control target
= control target key end

     0   :  { %8 = vsyncpa [#allocation5], 0  ;;  %s890_s0 = inlined_call_operand.vmem [shape: f32[3], index: 0, kind: input, shape index: {}]   ;;  %s891_s1 = inlined_call_operand.vmem [shape: s32[16,1], index: 1, kind: input, shape index: {}]   ;;  %s892_s2 = inlined_call_operand.hbm [shape: f32[64,256], index: 2, kind: input, shape index: {}]   ;;  %s893_s3 = inlined_call_operand.hbm [shape: f32[64,256], index: 3, kind: output, shape index: {}]  }
   0x1   :  { %9 = vsyncpa [#allocation3], 0 }
   0x2   :  { %11 = vsyncpa [#allocation3 + $0x1], 0 }
   0x3   :  { %12 = vsyncpa [#allocation4], 0 }
   0x4   :  { %14 = vsyncpa [#allocation4 + $0x1], 0  ;;  %s644_s12 = smov 0   ;;  %s646_s13 = smov 0  }
   0x5   :  { %s648_s14 = smov 0   ;;  %s650_s15 = smov 0  }
   0x6 LB: > { %s665_s16 = sadd.s32 4294967295, %s614_s15   ;;  %s401_s17 = sadd.s32 4294967294, %s614_s15   ;;  %s614_s15 = sphi %s650_s15, %s920_s15   ;;  %s610_s14 = sphi %s648_s14, %s919_s14   ;;  %s606_s13 = sphi %s646_s13, %s918_s13   ;;  %s602_s12 = sphi %s644_s12, %s917_s12  }
   0x7   : > { %s669_s18 = sadd.s32 1, %s614_s15   ;;  %s69_s19 = sadd.s32 1, %s610_s14 }
   0x8   : > { %s66_s20 = ssub.s32 %s614_s15, %s669_s18  ;;  %p76_p0 = scmp.ne.s32.totalorder %s610_s14, %s606_s13 }
   0x9   : > { %p67_p1 = scmp.eq.s32.totalorder %s66_s20, 0  ;;  %p77_p2 = scmp.eq.s32.totalorder %s614_s15, 0 }
   0xa   : > { %p82_p3 = scmp.ne.s32.totalorder %s606_s13, %s602_s12  ;;  %p895_p4 = scmp.eq.s32.totalorder %s665_s16, 0 }
   0xb   : > { %s681_s21 = scalar_select %p67_p1, %s610_s14, %s69_s19  }
   0xc   : > { %p683_p5 = por %p77_p2, %p76_p0  ;;  %p689_p6 = por %p895_p4, %p82_p3 }
   0xd   : > { %p106_p7 = scmp.eq.s32.totalorder %s665_s16, 3  ;;  %p112_p8 = scmp.eq.s32.totalorder %s401_s17, 3 }
   0xe   : > { %s898_s23 = scalar_select %p689_p6, 1, 0 }
   0xf   : > { %p402_p9 = scmp.ge.s32.totalorder %s614_s15, 1  ;;  %p119_p10 = scmp.lt.s32.totalorder %s614_s15, 5 }
  0x10   : > { %p696_p11 = por %p106_p7, %p76_p0  ;;  %p700_p12 = por %p112_p8, %p82_p3 }
  0x11   : > { %p704_p13 = pnand %p402_p9, %p119_p10  ;;  %s132_s29 = sshll.u32 %s890_s0, 4  ;;  %s133_s29 = int_to_ptr.vmem [resolvable:$true] %s132_s29 }
  0x12   : > { %s899_s24 = scalar_select %p696_p11, 1, 0 }
  0x13   : > { %s900_s25 = scalar_select %p700_p12, 1, 0 }
  0x14   : > { %p435_p1 = pneg %p704_p13  ;;  %p448_p0 = scmp.lt.s32.totalorder %s614_s15, 4 }
  0x15   : > { %s146_s4 = sand.u32 1, %s610_s14   ;;  %s499_s7 = scalar_lea.vmem %s133_s29, 16 }
  0x16   : > { %p716_p2 = pnand %p435_p1, %p895_p4  ;;  %p723_p3 = pnand %p448_p0, %p683_p5 }
  0x17   : > { %s405_s6 = sshll.u32 %s146_s4, 5  ;;  %p500_p7 = scmp.ne.s32.totalorder %s133_s29, %s499_s7 }
  0x18   : > { %p501_p8 = pneg %p716_p2  ;;  %p507_p12 = scmp.lt.s32.totalorder %s133_s29, %s133_s29 }
  0x19   : > { %p508_p11 = scmp.lt.s32.totalorder %s499_s7, %s499_s7 }
  0x1a   : > { %p502_p9 = pnand %p501_p8, %p500_p7 }
  0x1b   : > { %p509_p1 = por %p508_p11, %p507_p12 }
  0x1c   : > { %p503_p10 = pneg %p502_p9 }
  0x1e   : > { %p510_p4 = pnand %p509_p1, %p503_p10 }
  0x20   : > { %513 = shalt.err (!%p510_p4)
}
  0x21   : > { %s616_s8 = smov [#allocation2]   ;;  %s424_s9 = sshll.u32 %s614_s15, 9 }
  0x22   : > { %438 = dma.vmem_to_smem (!%p716_p2), %s133_s29, 16, %s616_s8, [#allocation5]  }
  0x23   : > { %s150_s10 = scalar_lea.vmem [#allocation6], %s405_s6  ;;  %s735_s20 = scalar_lea.hbm %s892_s2, %s424_s9 }
  0x24   : > { %s158_s11 = sshll.u32 %s150_s10, 4  ;;  %s739_s22 = scalar_lea.sflag [#allocation3], %s146_s4  ;;  %s737_s11 = int_to_ptr.vmem [resolvable:$true] %s158_s11 }
  0x25   : > { %s514_s27 = scalar_lea.hbm %s735_s20, 512  ;;  %p516_p5 = pneg %p723_p3 }
  0x26   : > { %p515_p4 = scmp.ne.s32.totalorder %s735_s20, %s514_s27  ;;  %s519_s30 = scalar_lea.hbm %s892_s2, 2048 }
  0x27   : > { %p520_p0 = scmp.lt.u32.totalorder %s735_s20, %s892_s2  ;;  %p521_p2 = scmp.lt.u32.totalorder %s519_s30, %s514_s27 }
  0x28   : > { %p517_p11 = pnand %p516_p5, %p515_p4  ;;  %p523_p8 = scmp.lt.u32.totalorder %s514_s27, %s735_s20 }
  0x29   : > { %p522_p7 = por %p521_p2, %p520_p0 }
  0x2a   : > { %p518_p12 = pneg %p517_p11 }
  0x2b   : > { %p524_p9 = por %p523_p8, %p522_p7 }
  0x2d   : > { %p525_p10 = pnand %p524_p9, %p518_p12 }
  0x2f   : > { %528 = shalt.err (!%p525_p10)
}
  0x30   : > { %s529_s4 = scalar_lea.vmem %s737_s11, 512  ;;  %s617_s8 = smov [#allocation6]  }
  0x31   : > { %p530_p1 = scmp.ne.s32.totalorder %s737_s11, %s529_s4  ;;  %s534_s9 = sshll.u32 %s617_s8, 4  ;;  %s535_s9 = int_to_ptr.vmem [resolvable:$false] %s534_s9 }
  0x32   : > { %s536_s10 = scalar_lea.vmem %s535_s9, 1024  ;;  %p537_p6 = scmp.lt.s32.totalorder %s737_s11, %s535_s9 }
  0x33   : > { %p532_p4 = pnand %p530_p1, %p516_p5  ;;  %p538_p0 = scmp.lt.s32.totalorder %s536_s10, %s529_s4 }
  0x35   : > { %p533_p11 = pneg %p532_p4  ;;  %p539_p2 = por %p538_p0, %p537_p6 }
  0x37   : > { %p540_p7 = pnand %p539_p2, %p533_p11 }
  0x39   : > { %543 = shalt.err (!%p540_p7)
}
  0x3a   : > { %s618_s17 = smov 256   ;;  %s619_s19 = smov 16  }
  0x3b   : > { %442 = dma.hbm_to_vmem [thread:$0]  (!%p723_p3), %s735_s20, 512, %s737_s11, %s739_s22, %s618_s17, %s618_s17, %s619_s19  }
  0x3c   : > { %170 = sbr.rel (%p704_p13) target bundleno = 411 (0x19b), region = 32  ;;  %p904_p5 = scmp.eq.s32.totalorder (!%p704_p13), %s665_s16, 0 }
  0x43   : > { %589 = dma.done.wait (%p904_p5), [#allocation5], 16   ;;  %p905_p12 = pmov %p904_p5 }
  0x44   : > { %s774_s27 = sand.u32 1, %s606_s13   ;;  %p906_p6 = scmp.ne.s32.totalorder %s898_s23, 0 }
  0x45   : > { %591 = vsyncadd (%p905_p12), [#allocation5], 4294967280  ;;  %s411_s28 = sshll.u32 %s774_s27, 5  ;;  %s177_s29 = scalar_lea.sflag [#allocation3], %s774_s27 }
  0x46   : > { %s180_s5 = scalar_lea.vmem [#allocation6], %s411_s28 }
  0x47   : > { %593 = dma.done.wait (%p906_p6), %s177_s29, 512  }
  0x48   : > { %595 = vsyncadd (%p906_p6), %s177_s29, 4294966784 }
  0x49   : > { %185 = sfence }
  0x4a   : > { %v784_v0 = vld [vmem:[%s180_s5] sm:$0xff]  ;;  %v786_v1 = vld [vmem:[%s180_s5 + $0x8] sm:$0xff]  ;;  %v788_v2 = vld [vmem:[%s180_s5 + $0x10] sm:$0xff]  ;;  %v620_v6 = vmov 0   ;;  %v223_v10 = vlaneseq  ;;  %s802_s22 = sld [smem:[#allocation2 + $0x1]]  ;;  %s804_s30 = sld [smem:[#allocation2]] }
  0x4b   : > { %v210_v3 = vadd.f32 %v786_v1, %v784_v0  ;;  %v792_v4 = vld [vmem:[%s180_s5 + $0x18] sm:$0xff]  ;;  %489 = vset.pattern.permute.xlu1 %v620_v6  ;;  %490 = vset.pattern.permute.xlu0 %v620_v6  ;;  %v219_v7 = vld [vmem:[%s891_s1] sm:$0xff]  ;;  %v220_v8 = vld [vmem:[%s891_s1 + $0x8] sm:$0xff]  ;;  %s806_s6 = sld [smem:[#allocation2 + $0x2]]  ;;  %s203_s7 = scalar_lea.vmem [#allocation7], %s411_s28 }
  0x4c   : > { %v213_v5 = vadd.f32 %v792_v4, %v788_v2  ;;  %v228_v9 = vadd.s32 4294967295, %v219_v7  ;;  %v229_v11 = vadd.s32 4294967295, %v220_v8  ;;  %v255_v12 = vadd.s32 1, %v219_v7  ;;  %s316_s4 = sshll.u32 %s203_s7, 4  ;;  %s426_s8 = sshll.u32 %s665_s16, 9  ;;  %s840_s4 = int_to_ptr.vmem [resolvable:$true] %s316_s4 }
  0x4d   : > { %211 = vadd.xlane.f32.xlu0 %v210_v3  ;;  %v256_v14 = vadd.s32 1, %v220_v8  ;;  %v224_v15 = vshrl.u32 %v223_v10, 7  ;;  %s845_s17 = scalar_lea.hbm %s893_s3, %s426_s8  ;;  %s302_s16 = scalar_lea.sflag [#allocation4], %s774_s27 }
  0x4e   : > { %vm230_vm0 = vcmp.ge.s32.totalorder %v228_v9, 0  ;;  %vm232_vm1 = vcmp.lt.s32.totalorder %v228_v9, 8  ;;  %vm231_vm2 = vcmp.ge.s32.totalorder %v229_v11, 0  ;;  %vm233_vm3 = vcmp.lt.s32.totalorder %v229_v11, 8  ;;  %s544_s19 = scalar_lea.vmem %s840_s4, 512  ;;  %p915_p3 = scmp.ne.s32.totalorder %s899_s24, 0 }
  0x4f   : > { %vm257_vm4 = vcmp.ge.s32.totalorder %v255_v12, 0  ;;  %vm259_vm5 = vcmp.lt.s32.totalorder %v255_v12, 8  ;;  %vm808_vm6 = vmand %vm230_vm0, %vm232_vm1  ;;  %vm258_vm7 = vcmp.ge.s32.totalorder %v256_v14, 0  ;;  %vm260_vm8 = vcmp.lt.s32.totalorder %v256_v14, 8  ;;  %p545_p13 = scmp.ne.s32.totalorder %s840_s4, %s544_s19  ;;  %s621_s28 = smov [#allocation7]  }
  0x50   : > { %vm812_vm9 = vmand %vm231_vm2, %vm233_vm3  ;;  %vm225_vm10 = vcmp.lt.s32.totalorder %v224_v15, 1  ;;  %vm252_vm11 = vcmp.lt.s32.totalorder %v224_v15, 7  ;;  %v245_v27 = vstv %s802_s22  ;;  %v239_v28 = vstv %s804_s30  ;;  %s548_s29 = sshll.u32 %s621_s28, 4  ;;  %s549_s29 = int_to_ptr.vmem [resolvable:$false] %s548_s29 }
  0x51   : > { %214 = vadd.xlane.f32.xlu0 %v213_v5  ;;  %vm816_vm12 = vmand %vm257_vm4, %vm259_vm5  ;;  %v266_v29 = vstv %s806_s6  ;;  %p546_p8 = pnand %p545_p13, %p915_p3  ;;  %s550_s5 = scalar_lea.vmem %s549_s29, 1024 }
  0x52   : > { %vm820_vm13 = vmand %vm258_vm7, %vm260_vm8  ;;  %p551_p10 = scmp.lt.s32.totalorder %s840_s4, %s549_s29  ;;  %p552_p1 = scmp.lt.s32.totalorder %s550_s5, %s544_s19 }
  0x53   : > { %p547_p9 = pneg %p546_p8 }
  0x54   : > { %p553_p4 = por %p552_p1, %p551_p10 }
  0x56   : > { %p554_p11 = pnand %p553_p4, %p547_p9 }
  0xda   : > { %v212_v13 = vpop.xlane.xlu0 %211 }
  0xdb   : > { %v217_v16 = vmul.f32 0.00390625, %v212_v13 }
  0xdd   : > { %v221_v22 = vrot.slane %v217_v16, 7  ;;  %v250_v23 = vrot.slane %v217_v16, 1  ;;  %v246_v38 = vmul.f32 %v245_v27, %v217_v16 }
  0xde   : > { %v215_v18 = vpop.xlane.xlu0 %214 }
  0xdf   : > { %v218_v20 = vmul.f32 0.00390625, %v215_v18 }
  0xe1   : > { %v222_v25 = vrot.slane %v218_v20, 7  ;;  %v251_v26 = vrot.slane %v218_v20, 1  ;;  %v247_v41 = vmul.f32 %v245_v27, %v218_v20 }
  0xe3   : > { %v226_v30 = vsel %vm225_vm10, %v221_v22, %v222_v25  ;;  %v227_v31 = vsel %vm225_vm10, %v222_v25, %v221_v22  ;;  %v253_v32 = vsel %vm252_vm11, %v250_v23, %v251_v26  ;;  %v254_v33 = vsel %vm252_vm11, %v251_v26, %v250_v23 }
  0xe4   : > { %v236_v34 = vsel %vm808_vm6, %v227_v31, 0.0  ;;  %v237_v35 = vsel %vm812_vm9, %v226_v30, 0.0  ;;  %v263_v36 = vsel %vm816_vm12, %v253_v32, 0.0  ;;  %v264_v37 = vsel %vm820_vm13, %v254_v33, 0.0 }
  0xe5   : > { %v240_v39 = vmul.f32 %v239_v28, %v236_v34  ;;  %v241_v40 = vmul.f32 %v239_v28, %v237_v35  ;;  %v267_v44 = vmul.f32 %v266_v29, %v263_v36  ;;  %v268_v45 = vmul.f32 %v266_v29, %v264_v37 }
  0xe7   : > { %v248_v42 = vadd.f32 %v246_v38, %v240_v39  ;;  %v249_v43 = vadd.f32 %v247_v41, %v241_v40 }
  0xe9   : > { %v269_v46 = vadd.f32 %v267_v44, %v248_v42  ;;  %v270_v47 = vadd.f32 %v268_v45, %v249_v43 }
  0xeb   : > { %v415_v48 = vmul.f32 -1.442695, %v269_v46  ;;  %v416_v49 = vmul.f32 -1.442695, %v270_v47 }
  0xed   : > { %491 = vpow2.f32 %v416_v49 }
  0xee   : > { %493 = vpow2.f32 %v415_v48 }
  0xf7   : > { %v492_v50 = vpop.eup %491 }
  0xf8   : > { %v494_v51 = vpop.eup %493  ;;  %v278_v53 = vadd.f32 1.0, %v492_v50 }
  0xf9   : > { %v277_v52 = vadd.f32 1.0, %v494_v51 }
  0xfb   : > { %495 = vrcp.f32 %v277_v52 }
  0xfc   : > { %497 = vrcp.f32 %v278_v53 }
 0x105   : > { %v496_v54 = vpop.eup %495 }
 0x106   : > { %285 = vperm.xlu1 %489, %v496_v54   ;;  %v498_v55 = vpop.eup %497 }
 0x10a   : > { %290 = vperm.xlu1 %489, %v498_v55  }
 0x185   : > { %v286_v56 = vpop.permute.xlu1 %285 }
 0x186   : > { %v293_v57 = vmul.f32 %v286_v56, %v784_v0  ;;  %v294_v58 = vmul.f32 %v286_v56, %v786_v1 }
 0x188   : > { %297 = vst [vmem:[%s203_s7] sm:$0xff] %v293_v57  ;;  %298 = vst [vmem:[%s203_s7 + $0x8] sm:$0xff] %v294_v58 }
 0x189   : > { %v291_v59 = vpop.permute.xlu1 %290 }
 0x18a   : > { %v295_v60 = vmul.f32 %v291_v59, %v788_v2  ;;  %v296_v61 = vmul.f32 %v291_v59, %v792_v4 }
 0x18c   : > { %299 = vst [vmem:[%s203_s7 + $0x10] sm:$0xff] %v295_v60  ;;  %300 = vst [vmem:[%s203_s7 + $0x18] sm:$0xff] %v296_v61 }
 0x18d   : > { %557 = shalt.err (!%p554_p11)
}
 0x18e   : > { %s558_s23 = scalar_lea.hbm %s845_s17, 512  ;;  %s562_s20 = scalar_lea.hbm %s893_s3, 2048 }
 0x18f   : > { %p559_p0 = scmp.ne.s32.totalorder %s845_s17, %s558_s23  ;;  %p563_p5 = scmp.lt.u32.totalorder %s845_s17, %s893_s3 }
 0x190   : > { %p564_p12 = scmp.lt.u32.totalorder %s562_s20, %s558_s23  ;;  %p566_p13 = scmp.lt.u32.totalorder %s558_s23, %s845_s17 }
 0x191   : > { %p560_p2 = pnand %p559_p0, %p915_p3 }
 0x192   : > { %p565_p6 = por %p564_p12, %p563_p5 }
 0x193   : > { %p561_p7 = pneg %p560_p2 }
 0x194   : > { %p567_p8 = por %p566_p13, %p565_p6 }
 0x196   : > { %p568_p9 = pnand %p567_p8, %p561_p7 }
 0x198   : > { %571 = shalt.err (!%p568_p9)
}
 0x199   : > { %s622_s6 = smov 256   ;;  %s623_s7 = smov 16  }
 0x19a   : > { %433 = dma.vmem_to_hbm [thread:$0]  (%p915_p3), %s840_s4, 512, %s845_s17, %s302_s16, %s622_s6, %s622_s6, %s623_s7  }
 0x19b PF: > { %p450_p10 = scmp.ge.s32.totalorder %s614_s15, 2  ;;  %s331_s8 = sand.u32 1, %s602_s12  }
 0x19c   : > { %p916_p1 = scmp.ne.s32.totalorder %s900_s25, 0  ;;  %s332_s9 = scalar_lea.sflag [#allocation4], %s331_s8 }
 0x19e   : > { %p444_p4 = pnand %p450_p10, %p916_p1 }
 0x1a0   : > { %597 = dma.done.wait (!%p444_p4), %s332_s9, 512  }
 0x1a1   : > { %599 = vsyncadd (!%p444_p4), %s332_s9, 4294966784  ;;  %p17_p11 = scmp.ge.s32.totalorder %s669_s18, 6   ;;  %s917_s12 = smov %s606_s13 }
 0x1a2   : > { %s918_s13 = smov %s610_s14  ;;  %s919_s14 = smov %s681_s21 }
 0x1a3   : > { %s920_s15 = smov %s669_s18  ;;  %19 = sbr.rel (!%p17_p11) target bundleno = 6 (0x6), region = 82 }
 0x1aa   :  { %337 = vsyncpa [#allocation3], 1 }
 0x1ab   :  { %339 = vsyncpa [#allocation3 + $0x1], 1 }
 0x1ac   :  { %340 = vsyncpa [#allocation4], 1 }
 0x1ad   :  { %342 = vsyncpa [#allocation4 + $0x1], 1 }
 0x1ae   :  { %343 = vsyncpa [#allocation5], 1 }
 0x1af   :  { %345 = vsyncpa [#allocation5 + $0x1], 1 }

</bundles_post_ra>
